<compile_context>
chip_gen: v7x
topology: tpu7x:2x2x1
jax: 0.10.0
libtpu: 0.0.40
codegen_flags: <defaults>
</compile_context>

<pallas_src>
import math
import functools

import jax
import jax.numpy as jnp
from jax.experimental import pallas as pl
from jax.experimental.pallas import tpu as pltpu


_SUPPORTED = ("relu", "tanh", "swish", "gelu", "leakyrelu")


# ---------------------------------------------------------------------------
# Activation math (used inside the kernel, computed in f32)
# ---------------------------------------------------------------------------
def _apply_activation(x, hidden_act: str):
    act = hidden_act.lower()
    if act == "relu":
        return jnp.maximum(x, 0.0)
    elif act == "tanh":
        return jnp.tanh(x)
    elif act == "swish":
        return x * jax.nn.sigmoid(x)
    elif act == "gelu":
        # gelu_new (tanh approximation, identical to OpenAI GPT / Google BERT)
        c = math.sqrt(2.0 / math.pi)
        return 0.5 * x * (1.0 + jnp.tanh(c * (x + 0.044715 * (x * x * x))))
    elif act == "leakyrelu":
        # torch.nn.functional.leaky_relu default negative_slope = 0.01
        return jnp.where(x >= 0, x, 0.01 * x)
    else:
        raise ValueError(f"unsupported hidden_act: {hidden_act}")


# ---------------------------------------------------------------------------
# Pallas kernel
# ---------------------------------------------------------------------------
def _activation_kernel(x_ref, o_ref, *, hidden_act: str):
    # Upcast once to f32 (v5e VPU/EUP have no bf16; also matches reference
    # numerics), compute, downcast on store.
    x = x_ref[...].astype(jnp.float32)
    o_ref[...] = _apply_activation(x, hidden_act).astype(o_ref.dtype)


# ---------------------------------------------------------------------------
# Layout helpers
# ---------------------------------------------------------------------------
def _sublane_multiple(dtype) -> int:
    # 8 rows per vreg for 4-byte dtypes, 16 for 2-byte, 32 for 1-byte.
    itemsize = jnp.dtype(dtype).itemsize
    return max(8, 32 // itemsize)


def _choose_lane_width(total: int) -> int:
    # Largest lane-dense width (multiple of 128) that divides the element
    # count -> zero padding in the common case.
    for lanes in (4096, 2048, 1024, 512, 256, 128):
        if total % lanes == 0:
            return lanes
    return 128  # exotic total: tiny tail pad (< 128 elements) will be added


# ---------------------------------------------------------------------------
# Wrapper
# ---------------------------------------------------------------------------
def activation_function(x, hidden_act: str, *, target_block_bytes: int = 2 << 20):
    """Elementwise activation, matching Activation_Function_Class.forward."""
    if hidden_act.lower() not in _SUPPORTED:
        raise ValueError(f"unsupported hidden_act: {hidden_act}")

    orig_shape = x.shape
    orig_dtype = x.dtype
    itemsize = jnp.dtype(orig_dtype).itemsize

    total = 1
    for d in orig_shape:
        total *= d

    lanes = _choose_lane_width(total)
    pad = (-total) % lanes

    flat = x.reshape(total)
    if pad:
        # Rare path (total not a multiple of 128).  Zeros are safe: every
        # supported activation maps 0 -> 0; padded tail is sliced off below.
        flat = jnp.pad(flat, (0, pad))
    padded_total = total + pad
    rows = padded_total // lanes
    x2d = flat.reshape(rows, lanes)

    # Dtype-aware sublane tile; target ~2 MiB blocks (caps at ~4 MiB row count
    # only for very wide lanes, still fine for v7x's 64 MiB VMEM).
    sub = _sublane_multiple(orig_dtype)
    block_rows = max(sub, (target_block_bytes // (lanes * itemsize)) // sub * sub)
    if block_rows >= rows:
        block_rows = rows  # full-extent block is always legal
    grid = (pl.cdiv(rows, block_rows),)

    block_bytes = block_rows * lanes * itemsize
    # Double-buffered input + output blocks, plus headroom.
    vmem_limit = int(4 * block_bytes) + (8 << 20)

    kernel = functools.partial(_activation_kernel, hidden_act=hidden_act)

    transcendentals = 0 if hidden_act.lower() in ("relu", "leakyrelu") else padded_total

    out2d = pl.pallas_call(
        kernel,
        out_shape=jax.ShapeDtypeStruct((rows, lanes), orig_dtype),
        grid_spec=pl.GridSpec(
            grid=grid,
            in_specs=[pl.BlockSpec((block_rows, lanes), lambda i: (i, 0))],
            out_specs=pl.BlockSpec((block_rows, lanes), lambda i: (i, 0)),
        ),
        compiler_params=pltpu.CompilerParams(
            dimension_semantics=("parallel",),
            vmem_limit_bytes=vmem_limit,
        ),
        cost_estimate=pl.CostEstimate(
            flops=8 * padded_total,
            transcendentals=transcendentals,
            bytes_accessed=2 * padded_total * itemsize,
        ),
    )(x2d)

    out_flat = out2d.reshape(padded_total)
    if pad:
        out_flat = out_flat[:total]
    return out_flat.reshape(orig_shape)


# ---------------------------------------------------------------------------
# Pure-JAX reference for correctness checking (f32 math, cast back)
# ---------------------------------------------------------------------------
def _reference(x, hidden_act: str):
    return _apply_activation(x.astype(jnp.float32), hidden_act).astype(x.dtype)


if __name__ == "__main__":
    key = jax.random.PRNGKey(0)
    ok = True

    # NCHW input, consistent with the vision-transformer-adapter context.
    x_f32 = jax.random.normal(key, (2, 4, 16, 16), dtype=jnp.float32)
    # bf16 input (exercises the dtype-aware sublane path / f32 internal math).
    x_bf16 = x_f32.astype(jnp.bfloat16)
    # Exotic shape whose element count is not a multiple of 128 (tail-pad path).
    x_odd = jax.random.normal(jax.random.PRNGKey(1), (3, 5, 7), dtype=jnp.float32)

    cases = [
        ("f32", x_f32, 1e-5),
        ("bf16", x_bf16, 2e-2),
        ("odd", x_odd, 1e-5),
    ]

    for act in _SUPPORTED:
        for name, xin, tol in cases:
            out = activation_function(xin, act)
            out = jax.block_until_ready(out)
            ref = _reference(xin, act)
            err = float(jnp.max(jnp.abs(out.astype(jnp.float32)
                                        - ref.astype(jnp.float32))))
            if not (err <= tol):
                ok = False
                print(f"MISMATCH for {act} ({name}): max err {err}")

    if ok:
        print("KERNEL_OK")
</pallas_src>

<mosaic_0001>
module attributes {stable_mosaic.version = 11 : i64} {
  func.func @_activation_kernel(%arg0: i32, %arg1: memref<1x2048xf32, #tpu.memory_space<vmem>>, %arg2: memref<1x2048xf32, #tpu.memory_space<vmem>>) attributes {dimension_semantics = [#tpu.dimension_semantics<parallel>], iteration_bounds = array<i64: 1>, scalar_prefetch = 0 : i64, scratch_operands = 0 : i64, tpu.core_type = #tpu.core_type<tc>, window_params = [{transform_indices = @transform_0, window_bounds = array<i64: 1, 2048>}, {transform_indices = @transform_1, window_bounds = array<i64: 1, 2048>}]} {
    %c0 = arith.constant 0 : index
    %c0_0 = arith.constant 0 : index
    %0 = vector.load %arg1[%c0, %c0_0] : memref<1x2048xf32, #tpu.memory_space<vmem>>, vector<1x2048xf32>
    %cst = arith.constant 0.000000e+00 : f32
    %1 = vector.broadcast %cst : f32 to vector<1x2048xf32>
    %2 = arith.maximumf %0, %1 : vector<1x2048xf32>
    %c0_1 = arith.constant 0 : index
    %c0_2 = arith.constant 0 : index
    %3 = vector.load %arg2[%c0_1, %c0_2] : memref<1x2048xf32, #tpu.memory_space<vmem>>, vector<1x2048xf32>
    tpu.vector_store %arg2[%c0_1, %c0_2], %2 {strides = array<i32>} : memref<1x2048xf32, #tpu.memory_space<vmem>>, vector<1x2048xf32>,
    return
  }
  func.func @transform_0(%arg0: i32) -> (i32, i32) {
    %c0_i32 = arith.constant 0 : i32
    %c0_i32_0 = arith.constant 0 : i32
    return %arg0, %c0_i32 : i32, i32
  }
  func.func @transform_1(%arg0: i32) -> (i32, i32) {
    %c0_i32 = arith.constant 0 : i32
    %c0_i32_0 = arith.constant 0 : i32
    return %arg0, %c0_i32 : i32, i32
  }
}

</mosaic_0001>

<bundles_post_ra>
// kernel: tpu_custom_call.1
= control target key start
LH: loop header
LB: loop body
LE: loop exit
PB: predicated region body
PF: predicated region fallthrough
CT: control target
= control target key end

     0   :  { %6 = vsyncpa [#allocation3], 0  ;;  %s128_s0 = inlined_call_operand.hbm [shape: f32[1,2048], index: 0, kind: input, shape index: {}]   ;;  %s129_s1 = inlined_call_operand.hbm [shape: f32[1,2048], index: 1, kind: output, shape index: {}]  }
   0x1   :  { %7 = vsyncpa [#allocation4], 0  ;;  %s92_s6 = smov [#allocation2]   ;;  %s44_s10 = scalar_lea.hbm %s128_s0, 256 }
   0x2   :  { %s14_s7 = sshll.u32 %s92_s6, 4  ;;  %p45_p0 = scmp.ne.s32.totalorder %s128_s0, %s44_s10  ;;  %s15_s7 = int_to_ptr.vmem [resolvable:$true] %s14_s7 }
   0x3   :  { %p48_p1 = scmp.lt.u32.totalorder %s44_s10, %s128_s0 }
   0x5   :  { %p50_p2 = pnand %p48_p1, %p45_p0 }
   0x7   :  { %53 = shalt.err (!%p50_p2)
}
   0x8   :  { %s54_s15 = scalar_lea.vmem %s15_s7, 256  ;;  %p59_p4 = scmp.lt.s32.totalorder %s15_s7, %s15_s7 }
   0x9   :  { %p55_p3 = scmp.ne.s32.totalorder %s15_s7, %s54_s15  ;;  %p60_p5 = scmp.lt.s32.totalorder %s54_s15, %s54_s15 }
   0xb   :  { %p61_p6 = por %p60_p5, %p59_p4 }
   0xd   :  { %p62_p7 = pnand %p61_p6, %p55_p3 }
   0xf   :  { %65 = shalt.err (!%p62_p7)
}
  0x10   :  { %17 = dma.hbm_to_vmem [thread:$0]  %s128_s0, 256, %s15_s7, [#allocation3]  }
  0x11   :  { %88 = dma.done.wait [#allocation3], 256  }
  0x12   :  { %89 = vsyncadd [#allocation3], 4294967040  ;;  %s93_s18 = smov [#allocation5]   ;;  %v21_v0 = vld [vmem:[#allocation2] sm:$0xff]  ;;  %v22_v1 = vld [vmem:[#allocation2 + $0x8] sm:$0xff] }
  0x13   :  { %s33_s19 = sshll.u32 %s93_s18, 4  ;;  %v23_v2 = vmax.f32 %v21_v0, 0.0  ;;  %v24_v3 = vmax.f32 %v22_v1, 0.0  ;;  %s34_s19 = int_to_ptr.vmem [resolvable:$true] %s33_s19 }
  0x14   :  { %s66_s20 = scalar_lea.vmem %s34_s19, 256  ;;  %p71_p9 = scmp.lt.s32.totalorder %s34_s19, %s34_s19 }
  0x15   :  { %25 = vst [vmem:[#allocation5] sm:$0xff] %v23_v2  ;;  %26 = vst [vmem:[#allocation5 + $0x8] sm:$0xff] %v24_v3  ;;  %p67_p8 = scmp.ne.s32.totalorder %s34_s19, %s66_s20  ;;  %p72_p10 = scmp.lt.s32.totalorder %s66_s20, %s66_s20 }
  0x17   :  { %p73_p11 = por %p72_p10, %p71_p9 }
  0x19   :  { %p74_p12 = pnand %p73_p11, %p67_p8 }
  0x1b   :  { %77 = shalt.err (!%p74_p12)
}
  0x1c   :  { %s78_s22 = scalar_lea.hbm %s129_s1, 256 }
  0x1d   :  { %p79_p13 = scmp.ne.s32.totalorder %s129_s1, %s78_s22  ;;  %p82_p0 = scmp.lt.u32.totalorder %s78_s22, %s129_s1 }
  0x1f   :  { %p84_p1 = pnand %p82_p0, %p79_p13 }
  0x21   :  { %87 = shalt.err (!%p84_p1)
}
  0x22   :  { %36 = dma.vmem_to_hbm [thread:$0]  %s34_s19, 256, %s129_s1, [#allocation4]  }
  0x23   :  { %90 = dma.done.wait [#allocation4], 256  }
  0x24   :  { %91 = vsyncadd [#allocation4], 4294967040 }
  0x25   :  { %40 = vsyncpa [#allocation3], 1 }
  0x26   :  { %41 = vsyncpa [#allocation4], 1 }

</bundles_post_ra>
